<compile_context>
chip_gen: v7x
topology: tpu7x:2x2x1
jax: 0.10.0
libtpu: 0.0.40
codegen_flags: <defaults>
</compile_context>

<pallas_src>
import functools

import jax
import jax.numpy as jnp
import numpy as np
from jax.experimental import pallas as pl
from jax.experimental.pallas import tpu as pltpu


def _spatial_attention_kernel(x_ref, m_ref, o_ref, *, hw_valid, hw_padded):
    # x_ref : VMEM (bn, C, HWp)   input tile, native dtype, lane-dense
    # m_ref : VMEM (2*HWp, HWp)   fused conv matrix (f32), resident once
    # o_ref : VMEM (bn, C, HWp)   output tile
    x = x_ref[...]                                        # keep input dtype

    # Channel reductions in f32; results are small: (bn, HWp).
    avg = jnp.mean(x, axis=1, dtype=jnp.float32)
    mx = jnp.max(x, axis=1).astype(jnp.float32)
    am = jnp.concatenate([avg, mx], axis=-1)              # (bn, 2*HWp)

    if hw_valid != hw_padded:
        # Zero the lane-pad region so unspecified (possibly NaN/Inf) padded
        # reads cannot leak into valid conv outputs through the matmul.
        lane = jax.lax.broadcasted_iota(jnp.int32, am.shape, 1) % hw_padded
        am = jnp.where(lane < hw_valid, am, 0.0)

    # 7x7 "same" conv on both maps == one small MXU matmul (DEFAULT precision).
    conv = jnp.dot(am, m_ref[...], preferred_element_type=jnp.float32)

    att = jax.nn.sigmoid(conv).astype(x.dtype)            # EUP path
    # Final scale stays in the input dtype (no whole-tile f32 upcast).
    o_ref[...] = x * att[:, None, :]


def build_conv_matrix(conv_weight, H, W, hw_padded=None):
    """Fused (2*HWp, HWp) matrix M with [avg_flat | max_flat] @ M == same-conv.

    conv_weight: (1, 2, K, K) torch Conv2d(2, 1, K, padding=K//2, bias=False)
    weights; channel 0 acts on the channel-mean map, channel 1 on the max map.
    Cache / precompute per (conv_weight, H, W) when calling repeatedly.
    """
    K = conv_weight.shape[-1]
    pad = K // 2
    HW = H * W
    if hw_padded is None:
        hw_padded = HW
    w = conv_weight.astype(jnp.float32)

    dh = jnp.arange(H)[:, None] - jnp.arange(H)[None, :] + pad   # (Hi, Ho)
    dw = jnp.arange(W)[:, None] - jnp.arange(W)[None, :] + pad   # (Wi, Wo)
    vh = (dh >= 0) & (dh < K)
    vw = (dw >= 0) & (dw < K)
    dh_c = jnp.clip(dh, 0, K - 1)
    dw_c = jnp.clip(dw, 0, K - 1)
    valid = vh[:, None, :, None] & vw[None, :, None, :]          # (Hi,Wi,Ho,Wo)

    def one(w2d):
        m = w2d[dh_c[:, None, :, None], dw_c[None, :, None, :]]
        m = jnp.where(valid, m, 0.0)
        return m.reshape(HW, HW)

    m = jnp.zeros((2 * hw_padded, hw_padded), jnp.float32)
    m = m.at[:HW, :HW].set(one(w[0, 0]))                         # avg map
    m = m.at[hw_padded:hw_padded + HW, :HW].set(one(w[0, 1]))    # max map
    return m


def _vmem_capacity_bytes():
    try:
        return int(pltpu.get_tpu_info().vmem_capacity_bytes)
    except Exception:
        return 64 << 20            # conservative fallback (v7x per-core VMEM)


def spatial_attention(x, conv_weight, *, batch_tile=None, conv_matrix=None):
    """x: (N, C, H, W); conv_weight: (1, 2, K, K) (torch Conv2d layout)."""
    N, C, H, W = x.shape
    HW = H * W
    # Lane-dense block: round the lane extent up to a multiple of 128.  x is
    # NOT padded in HBM; OOB lanes are unspecified on read (masked in-kernel)
    # and dropped on write.
    HWp = -(-HW // 128) * 128
    itemsize = jnp.dtype(x.dtype).itemsize

    if conv_matrix is None:
        conv_matrix = build_conv_matrix(conv_weight, H, W, HWp)
    m_bytes = 2 * HWp * HWp * 4

    # --- VMEM accounting (sublane-padded C) & per-generation budget ---------
    sub = 8 * max(1, 4 // itemsize)            # 8 (f32) / 16 (bf16) / 32 (i8)
    c_pad = -(-C // sub) * sub                 # small C wastes sublanes; fine for C>=32
    bytes_per_batch = c_pad * HWp * itemsize

    vmem_cap = _vmem_capacity_bytes()
    vmem_budget = (vmem_cap * 3) // 4          # ~48 MiB on v7x, ~96 MiB on v5e/v6e
    # HBM-bound: target multi-MiB blocks so per-step overhead is <5% of DMA time.
    block_target = (8 << 20) if vmem_cap >= (100 << 20) else (3 << 20)

    def vmem_needed(bn_):
        # 2x double-buffered input + 2x output blocks, conv matrix (resident
        # once: whole-array VMEM operand, not pipelined), compiler headroom.
        return 4 * bn_ * bytes_per_batch + m_bytes + (2 << 20)

    if batch_tile is not None:
        bn = max(1, min(int(batch_tile), N))
    else:
        bn = max(1, block_target // bytes_per_batch)
        # >= 2 grid steps so the "parallel" axis can shard across both
        # TensorCores on v7x (neutral on single-TC v5e/v6e).
        bn = min(bn, max(1, (N + 1) // 2))
    while bn > 1 and vmem_needed(bn) > vmem_budget:
        bn = max(1, bn // 2)
    if vmem_needed(bn) > vmem_budget:
        raise ValueError(
            "SpatialAttention Pallas blocks do not fit VMEM even at "
            "batch_tile=1; use the Toeplitz / C-tiled variant "
            "(see TODO at top of file).")

    num_blocks = -(-N // bn)                   # cdiv: ragged tail handled by Pallas
    vmem_limit = int(min(vmem_budget,
                         max(32 << 20, vmem_needed(bn) + (8 << 20))))

    x_flat = x.reshape(N, C, HW)               # free row-major view

    kernel = functools.partial(
        _spatial_attention_kernel, hw_valid=HW, hw_padded=HWp)

    # TODO(synk): when the caller donates x, alias the output with x via
    # input_output_aliases to save an N*C*HW HBM allocation (capacity only).
    out_flat = pl.pallas_call(
        kernel,
        out_shape=jax.ShapeDtypeStruct((N, C, HW), x.dtype),
        grid=(num_blocks,),
        in_specs=[
            pl.BlockSpec((bn, C, HWp), lambda b: (b, 0, 0)),        # x tile
            pl.BlockSpec(memory_space=pltpu.MemorySpace.VMEM),      # conv matrix
        ],
        out_specs=pl.BlockSpec((bn, C, HWp), lambda b: (b, 0, 0)),
        compiler_params=pltpu.CompilerParams(
            dimension_semantics=("parallel",),
            vmem_limit_bytes=vmem_limit,
        ),
    )(x_flat, conv_matrix)

    return out_flat.reshape(N, C, H, W)


def spatial_attention_ref(x, conv_weight):
    """Pure-JAX reference mirroring the PyTorch module."""
    avg = jnp.mean(x, axis=1, keepdims=True)
    mx = jnp.max(x, axis=1, keepdims=True)
    out = jnp.concatenate([avg, mx], axis=1)                 # (N, 2, H, W)
    pad = conv_weight.shape[-1] // 2
    conv = jax.lax.conv_general_dilated(
        out, conv_weight, window_strides=(1, 1),
        padding=[(pad, pad), (pad, pad)],
        dimension_numbers=("NCHW", "OIHW", "NCHW"),
        precision=jax.lax.Precision.HIGHEST)
    return x * jax.nn.sigmoid(conv)


if __name__ == "__main__":
    key = jax.random.PRNGKey(0)
    kx, kw = jax.random.split(key)

    N, C, H, W = 2, 4, 16, 16
    K = 7
    x = jax.random.normal(kx, (N, C, H, W), dtype=jnp.float32)

    # Deterministic Conv2d(2, 1, 7, bias=False)-style (kaiming-uniform) init.
    fan_in = 2 * K * K
    bound = 1.0 / np.sqrt(fan_in)
    conv_weight = jax.random.uniform(
        kw, (1, 2, K, K), dtype=jnp.float32, minval=-bound, maxval=bound)

    out = jax.block_until_ready(spatial_attention(x, conv_weight))

    ref = spatial_attention_ref(x, conv_weight)
    # Loose tolerance: the in-kernel conv matmul runs at DEFAULT (bf16 MXU)
    # precision while the reference conv uses HIGHEST; the result only feeds a
    # sigmoid attention weight, so ~1e-2 agreement is the expected regime and
    # still catches any structural/indexing bug (those give O(1) errors).
    np.testing.assert_allclose(np.asarray(out), np.asarray(ref),
                               rtol=2e-2, atol=2e-2)
    print("KERNEL_OK")
</pallas_src>

<mosaic_0001>
module attributes {stable_mosaic.version = 11 : i64} {
  func.func @_spatial_attention_kernel(%arg0: i32, %arg1: memref<1x4x256xf32, #tpu.memory_space<vmem>>, %arg2: memref<512x256xf32, #tpu.memory_space<vmem>>, %arg3: memref<1x4x256xf32, #tpu.memory_space<vmem>>) attributes {dimension_semantics = [#tpu.dimension_semantics<parallel>], iteration_bounds = array<i64: 2>, scalar_prefetch = 0 : i64, scratch_operands = 0 : i64, tpu.core_type = #tpu.core_type<tc>, window_params = [{transform_indices = @transform_0, window_bounds = array<i64: 1, 4, 256>}, {pipeline_mode = #tpu.pipeline_mode<synchronous>, transform_indices = @transform_1, window_bounds = array<i64: 512, 256>}, {transform_indices = @transform_2, window_bounds = array<i64: 1, 4, 256>}]} {
    %c0 = arith.constant 0 : index
    %c0_0 = arith.constant 0 : index
    %c0_1 = arith.constant 0 : index
    %0 = vector.load %arg1[%c0, %c0_0, %c0_1] : memref<1x4x256xf32, #tpu.memory_space<vmem>>, vector<1x4x256xf32>
    %cst = arith.constant dense<0.000000e+00> : vector<1x256xf32>
    %1 = vector.multi_reduction <add>, %0, %cst [1] : vector<1x4x256xf32> to vector<1x256xf32>
    %cst_2 = arith.constant 4.000000e+00 : f32
    %2 = vector.broadcast %cst_2 : f32 to vector<1x256xf32>
    %3 = arith.divf %1, %2 : vector<1x256xf32>
    %cst_3 = arith.constant dense<0xFF800000> : vector<1x256xf32>
    %4 = vector.multi_reduction <maximumf>, %0, %cst_3 [1] : vector<1x4x256xf32> to vector<1x256xf32>
    %5 = tpu.concatenate %3, %4 in 1 : vector<1x256xf32>, vector<1x256xf32> -> vector<1x512xf32>
    %c0_4 = arith.constant 0 : index
    %c0_5 = arith.constant 0 : index
    %6 = vector.load %arg2[%c0_4, %c0_5] : memref<512x256xf32, #tpu.memory_space<vmem>>, vector<512x256xf32>
    %cst_6 = arith.constant dense<0.000000e+00> : vector<1x256xf32>
    %7 = tpu.matmul %5, %6, %cst_6 {dimension_numbers = #tpu.dot_dimension_numbers<[1], [0], [0], [1], [0, 0, 1, 1], [], []>} : vector<1x512xf32>, vector<512x256xf32>, vector<1x256xf32> -> vector<1x256xf32>
    %8 = arith.negf %7 : vector<1x256xf32>
    %9 = math.exp %8 : vector<1x256xf32>
    %cst_7 = arith.constant 1.000000e+00 : f32
    %10 = vector.broadcast %cst_7 : f32 to vector<1x256xf32>
    %11 = arith.addf %10, %9 : vector<1x256xf32>
    %12 = arith.divf %10, %11 : vector<1x256xf32>
    %13 = vector.shape_cast %12 : vector<1x256xf32> to vector<1x1x256xf32>
    %14 = vector.broadcast %13 : vector<1x1x256xf32> to vector<1x4x256xf32>
    %15 = arith.mulf %0, %14 : vector<1x4x256xf32>
    %c0_8 = arith.constant 0 : index
    %c0_9 = arith.constant 0 : index
    %c0_10 = arith.constant 0 : index
    %16 = vector.load %arg3[%c0_8, %c0_9, %c0_10] : memref<1x4x256xf32, #tpu.memory_space<vmem>>, vector<1x4x256xf32>
    tpu.vector_store %arg3[%c0_8, %c0_9, %c0_10], %15 {strides = array<i32>} : memref<1x4x256xf32, #tpu.memory_space<vmem>>, vector<1x4x256xf32>,
    return
  }
  func.func @transform_0(%arg0: i32) -> (i32, i32, i32) {
    %c0_i32 = arith.constant 0 : i32
    %c0_i32_0 = arith.constant 0 : i32
    %c0_i32_1 = arith.constant 0 : i32
    return %arg0, %c0_i32, %c0_i32_0 : i32, i32, i32
  }
  func.func @transform_1(%arg0: i32) -> (i32, i32) {
    %c0_i32 = arith.constant 0 : i32
    %c0_i32_0 = arith.constant 0 : i32
    %c0_i32_1 = arith.constant 0 : i32
    return %c0_i32, %c0_i32_0 : i32, i32
  }
  func.func @transform_2(%arg0: i32) -> (i32, i32, i32) {
    %c0_i32 = arith.constant 0 : i32
    %c0_i32_0 = arith.constant 0 : i32
    %c0_i32_1 = arith.constant 0 : i32
    return %arg0, %c0_i32, %c0_i32_0 : i32, i32, i32
  }
}

</mosaic_0001>

<bundles_post_ra>
// kernel: tpu_custom_call.1
= control target key start
LH: loop header
LB: loop body
LE: loop exit
PB: predicated region body
PF: predicated region fallthrough
CT: control target
= control target key end

     0   :  { %7 = vsyncpa [#allocation3], 0  ;;  %s1184_s0 = inlined_call_operand.hbm [shape: f32[2,4,256], index: 0, kind: input, shape index: {}]   ;;  %s1185_s1 = inlined_call_operand.hbm [shape: f32[512,256], index: 1, kind: input, shape index: {}]   ;;  %s1186_s2 = inlined_call_operand.hbm [shape: f32[2,4,256], index: 2, kind: output, shape index: {}]  }
   0x1   :  { %9 = vsyncpa [#allocation3 + $0x1], 0 }
   0x2   :  { %10 = vsyncpa [#allocation6], 0 }
   0x3   :  { %11 = vsyncpa [#allocation4], 0 }
   0x4   :  { %13 = vsyncpa [#allocation4 + $0x1], 0  ;;  %s970_s9 = smov 0   ;;  %s972_s10 = smov 0  }
   0x5   :  { %s974_s11 = smov 0   ;;  %s976_s12 = smov 0  }
   0x6 LB: > { %s991_s13 = sadd.s32 4294967295, %s948_s12   ;;  %s602_s14 = sadd.s32 4294967294, %s948_s12   ;;  %s948_s12 = sphi %s976_s12, %s1206_s12   ;;  %s944_s11 = sphi %s974_s11, %s1205_s11   ;;  %s940_s10 = sphi %s972_s10, %s1204_s10   ;;  %s936_s9 = sphi %s970_s9, %s1203_s9  }
   0x7   : > { %p39_p0 = scmp.ne.s32.totalorder %s940_s10, %s936_s9  ;;  %p1187_p1 = scmp.eq.s32.totalorder %s991_s13, 0 }
   0x8   : > { %p90_p3 = scmp.eq.s32.totalorder %s602_s14, 1  ;;  %p603_p5 = scmp.ge.s32.totalorder %s948_s12, 1 }
   0x9   : > { %p1000_p4 = por %p1187_p1, %p39_p0  ;;  %p97_p7 = scmp.lt.s32.totalorder %s948_s12, 3 }
   0xa   : > { %p1005_p6 = por %p90_p3, %p39_p0  ;;  %s950_s18 = smov [#allocation5]  }
   0xb   : > { %s1190_s15 = scalar_select %p1000_p4, 1, 0 }
   0xc   : > { %s1191_s16 = scalar_select %p1005_p6, 1, 0 }
   0xd   : > { %p1010_p8 = pnand %p603_p5, %p97_p7  ;;  %s109_s19 = sshll.u32 %s950_s18, 4  ;;  %s1014_s19 = int_to_ptr.vmem [resolvable:$true] %s109_s19 }
   0xe   : > { %s1026_s21 = sadd.s32 1, %s948_s12   ;;  %s26_s22 = sadd.s32 1, %s944_s11 }
   0xf   : > { %s1192_s17 = scalar_select %p1010_p8, 1, 0 }
  0x10   : > { %p760_p9 = pneg %p1010_p8  ;;  %s23_s23 = ssub.s32 %s948_s12, %s1026_s21 }
  0x11   : > { %s820_s26 = scalar_lea.hbm %s1185_s1, 16384 }
  0x12   : > { %p1021_p11 = pnand %p760_p9, %p1187_p1  ;;  %p821_p12 = scmp.ne.s32.totalorder %s1185_s1, %s820_s26 }
  0x13   : > { %p827_p5 = scmp.lt.u32.totalorder %s820_s26, %s1185_s1 }
  0x14   : > { %p822_p13 = pneg %p1021_p11 }
  0x16   : > { %p823_p0 = pnand %p822_p13, %p821_p12 }
  0x18   : > { %p824_p3 = pneg %p823_p0 }
  0x1a   : > { %p829_p7 = pnand %p827_p5, %p824_p3 }
  0x1c   : > { %832 = shalt.err (!%p829_p7)
}
  0x1d   : > { %s833_s3 = scalar_lea.vmem %s1014_s19, 16384  ;;  %p841_p2 = scmp.lt.s32.totalorder %s1014_s19, %s1014_s19 }
  0x1e   : > { %p834_p9 = scmp.ne.s32.totalorder %s1014_s19, %s833_s3  ;;  %p842_p6 = scmp.lt.s32.totalorder %s833_s3, %s833_s3 }
  0x20   : > { %p836_p10 = pnand %p834_p9, %p822_p13  ;;  %p843_p4 = por %p842_p6, %p841_p2 }
  0x22   : > { %p837_p1 = pneg %p836_p10 }
  0x24   : > { %p844_p8 = pnand %p843_p4, %p837_p1 }
  0x26   : > { %847 = shalt.err (!%p844_p8)
}
  0x27   : > { %s951_s4 = smov 256   ;;  %s952_s5 = smov 16  }
  0x28   : > { %763 = dma.hbm_to_vmem [thread:$0]  (!%p1021_p11), %s1185_s1, 16384, %s1014_s19, [#allocation6], %s951_s4, %s951_s4, %s952_s5  }
  0x29   : > { %p24_p2 = scmp.eq.s32.totalorder %s23_s23, 0  ;;  %p33_p1 = scmp.ne.s32.totalorder %s944_s11, %s940_s10 }
  0x2a   : > { %p34_p4 = scmp.eq.s32.totalorder %s948_s12, 0  ;;  %p773_p6 = scmp.lt.s32.totalorder %s948_s12, 2 }
  0x2b   : > { %s1057_s8 = scalar_select %p24_p2, %s944_s11, %s26_s22  }
  0x2c   : > { %p35_p8 = por %p34_p4, %p33_p1  ;;  %p1194_p10 = scmp.eq.s32.totalorder %s991_s13, 1 }
  0x2d   : > { %s123_s18 = sand.u32 1, %s944_s11   ;;  %s620_s24 = sshll.u32 %s948_s12, 7 }
  0x2e   : > { %p1061_p12 = por %p1194_p10, %p33_p1  ;;  %s606_s25 = sshll.u32 %s123_s18, 3 }
  0x2f   : > { %s1070_s27 = scalar_lea.hbm %s1184_s0, %s620_s24  ;;  %s127_s19 = scalar_lea.vmem [#allocation2], %s606_s25 }
  0x30   : > { %s135_s22 = sshll.u32 %s127_s19, 4  ;;  %p1072_p11 = pnand %p773_p6, %p35_p8  ;;  %s1076_s22 = int_to_ptr.vmem [resolvable:$true] %s135_s22 }
  0x31   : > { %s124_s28 = scalar_lea.sflag [#allocation3], %s123_s18  ;;  %s848_s29 = scalar_lea.hbm %s1070_s27, 128 }
  0x32   : > { %p849_p13 = scmp.ne.s32.totalorder %s1070_s27, %s848_s29  ;;  %p850_p0 = pneg %p1072_p11 }
  0x33   : > { %s853_s4 = scalar_lea.hbm %s1184_s0, 256  ;;  %p854_p7 = scmp.lt.u32.totalorder %s1070_s27, %s1184_s0 }
  0x34   : > { %p851_p3 = pnand %p850_p0, %p849_p13  ;;  %p855_p9 = scmp.lt.u32.totalorder %s853_s4, %s848_s29 }
  0x35   : > { %p857_p1 = scmp.lt.u32.totalorder %s848_s29, %s1070_s27 }
  0x36   : > { %p852_p5 = pneg %p851_p3  ;;  %p856_p2 = por %p855_p9, %p854_p7 }
  0x38   : > { %p858_p4 = por %p857_p1, %p856_p2 }
  0x3a   : > { %p859_p6 = pnand %p858_p4, %p852_p5 }
  0x3c   : > { %862 = shalt.err (!%p859_p6)
}
  0x3d   : > { %s863_s7 = scalar_lea.vmem %s1076_s22, 128  ;;  %s953_s18 = smov [#allocation2]  }
  0x3e   : > { %p864_p8 = scmp.ne.s32.totalorder %s1076_s22, %s863_s7  ;;  %s868_s24 = sshll.u32 %s953_s18, 4  ;;  %s869_s24 = int_to_ptr.vmem [resolvable:$false] %s868_s24 }
  0x3f   : > { %s870_s25 = scalar_lea.vmem %s869_s24, 256  ;;  %p871_p3 = scmp.lt.s32.totalorder %s1076_s22, %s869_s24 }
  0x40   : > { %p866_p10 = pnand %p864_p8, %p850_p0  ;;  %p872_p7 = scmp.lt.s32.totalorder %s870_s25, %s863_s7 }
  0x42   : > { %p867_p13 = pneg %p866_p10  ;;  %p873_p9 = por %p872_p7, %p871_p3 }
  0x44   : > { %p874_p2 = pnand %p873_p9, %p867_p13 }
  0x46   : > { %877 = shalt.err (!%p874_p2)
}
  0x47   : > { %767 = dma.hbm_to_vmem [thread:$0]  (!%p1072_p11), %s1070_s27, 128, %s1076_s22, %s124_s28  }
  0x48   : > { %p1197_p5 = scmp.ne.s32.totalorder %s1192_s17, 0 }
  0x49   : > { %s1106_s20 = sand.u32 (!%p1197_p5), 1, %s940_s10   ;;  %p1198_p0 = scmp.ne.s32.totalorder (!%p1197_p5), %s1190_s15, 0 }
  0x4a   : > { %144 = sbr.rel (%p1197_p5) target bundleno = 415 (0x19f), region = 28  ;;  %s610_s26 = sshll.u32 (!%p1197_p5), %s1106_s20, 3 }
  0x4b   : > { %s147_s19 = scalar_lea.sflag (!%p1197_p5), [#allocation3], %s1106_s20  ;;  %s1112_s29 = scalar_lea.vmem (!%p1197_p5), [#allocation2], %s610_s26 }
  0x51   : > { %923 = dma.done.wait (%p1198_p0), %s147_s19, 128  }
  0x52   : > { %925 = vsyncadd (%p1198_p0), %s147_s19, 4294967168  ;;  %p1199_p11 = scmp.eq.s32.totalorder %s991_s13, 0 }
  0x54   : > { %927 = dma.done.wait (%p1199_p11), [#allocation6], 16384   ;;  %p1200_p1 = pmov %p1199_p11 }
  0x55   : > { %v212_v0 = vld [vmem:[#allocation5 + $0x8] sm:$0xff]  ;;  %v214_v1 = vld [vmem:[#allocation5 + $0x18] sm:$0xff]  ;;  %v211_v5 = vld [vmem:[#allocation5] sm:$0xff]  ;;  %vm179_vm0 = vcmask 1043456   ;;  %s621_s15 = sshll.u32 %s991_s13, 7  ;;  %s174_s17 = scalar_lea.vmem [#allocation7], %s610_s26 }
  0x56   : > { %929 = vsyncadd (%p1200_p1), [#allocation6], 4294950912  ;;  %v276_v2 = vld [vmem:[#allocation5 + $0x208] sm:$0xff]  ;;  %v622_v3 = vpack.c.bf16 %v214_v1, %v212_v0  ;;  %v278_v4 = vld [vmem:[#allocation5 + $0x218] sm:$0xff]  ;;  %s522_s27 = sshll.u32 %s174_s17, 4  ;;  %s1140_s28 = scalar_lea.hbm %s1186_s2, %s621_s15  ;;  %s1142_s27 = int_to_ptr.vmem [resolvable:$true] %s522_s27 }
  0x57   : > { %v213_v6 = vld [vmem:[#allocation5 + $0x10] sm:$0xff]  ;;  %v686_v7 = vpack.c.bf16 %v278_v4, %v276_v2  ;;  %v275_v9 = vld [vmem:[#allocation5 + $0x200] sm:$0xff]  ;;  %v216_v11 = vld [vmem:[#allocation5 + $0x28] sm:$0xff]  ;;  %s508_s30 = scalar_lea.sflag [#allocation4], %s1106_s20  ;;  %s878_s3 = scalar_lea.vmem %s1142_s27, 128 }
  0x58   : > { %v624_v8 = vpack.c.bf16 %v213_v6, %v211_v5  ;;  %v277_v10 = vld [vmem:[#allocation5 + $0x210] sm:$0xff]  ;;  %623 = vmatprep.subr.bf16.mxu1 %v622_v3  ;;  %v218_v13 = vld [vmem:[#allocation5 + $0x38] sm:$0xff]  ;;  %v280_v14 = vld [vmem:[#allocation5 + $0x228] sm:$0xff]  ;;  %p879_p4 = scmp.ne.s32.totalorder %s1142_s27, %s878_s3  ;;  %s954_s13 = smov [#allocation7]  }
  0x59   : > { %v688_v12 = vpack.c.bf16 %v277_v10, %v275_v9  ;;  %v282_v15 = vld [vmem:[#allocation5 + $0x238] sm:$0xff]  ;;  %687 = vmatprep.subr.bf16.mxu0 %v686_v7  ;;  %v626_v16 = vpack.c.bf16 %v218_v13, %v216_v11  ;;  %v215_v18 = vld [vmem:[#allocation5 + $0x20] sm:$0xff]  ;;  %v217_v19 = vld [vmem:[#allocation5 + $0x30] sm:$0xff]  ;;  %s882_s4 = sshll.u32 %s954_s13, 4  ;;  %s883_s4 = int_to_ptr.vmem [resolvable:$false] %s882_s4 }
  0x5a   : > { %625 = vmatpush1.bf16.msra.mxu1 %v624_v8  ;;  %v690_v17 = vpack.c.bf16 %v282_v15, %v280_v14  ;;  %v279_v20 = vld [vmem:[#allocation5 + $0x220] sm:$0xff]  ;;  %v628_v21 = vpack.c.bf16 %v217_v19, %v215_v18  ;;  %v281_v22 = vld [vmem:[#allocation5 + $0x230] sm:$0xff]  ;;  %v220_v23 = vld [vmem:[#allocation5 + $0x48] sm:$0xff]  ;;  %p880_p6 = pnand %p879_p4, %p1061_p12  ;;  %s884_s5 = scalar_lea.vmem %s883_s4, 256 }
  0x5b   : > { %689 = vmatpush1.bf16.msra.mxu0 %v688_v12  ;;  %v222_v24 = vld [vmem:[#allocation5 + $0x58] sm:$0xff]  ;;  %627 = vmatprep.subr.bf16.mxu1 %v626_v16  ;;  %v692_v25 = vpack.c.bf16 %v281_v22, %v279_v20  ;;  %v284_v27 = vld [vmem:[#allocation5 + $0x248] sm:$0xff]  ;;  %v219_v29 = vld [vmem:[#allocation5 + $0x40] sm:$0xff]  ;;  %p885_p10 = scmp.lt.s32.totalorder %s1142_s27, %s883_s4  ;;  %p886_p13 = scmp.lt.s32.totalorder %s884_s5, %s878_s3 }
  0x5c   : > { %691 = vmatprep.subr.bf16.mxu0 %v690_v17  ;;  %v630_v26 = vpack.c.bf16 %v222_v24, %v220_v23  ;;  %v286_v28 = vld [vmem:[#allocation5 + $0x258] sm:$0xff]  ;;  %v221_v31 = vld [vmem:[#allocation5 + $0x50] sm:$0xff]  ;;  %v283_v32 = vld [vmem:[#allocation5 + $0x240] sm:$0xff]  ;;  %p881_p8 = pneg %p880_p6 }
  0x5d   : > { %v694_v30 = vpack.c.bf16 %v286_v28, %v284_v27  ;;  %v285_v33 = vld [vmem:[#allocation5 + $0x250] sm:$0xff]  ;;  %v632_v34 = vpack.c.bf16 %v221_v31, %v219_v29  ;;  %v224_v35 = vld [vmem:[#allocation5 + $0x68] sm:$0xff]  ;;  %v226_v36 = vld [vmem:[#allocation5 + $0x78] sm:$0xff]  ;;  %p887_p3 = por %p886_p13, %p885_p10 }
  0x5e   : > { %629 = vmatpush1.bf16.msra.mxu1 %v628_v21  ;;  %v288_v37 = vld [vmem:[#allocation5 + $0x268] sm:$0xff]  ;;  %v696_v38 = vpack.c.bf16 %v285_v33, %v283_v32  ;;  %v634_v39 = vpack.c.bf16 %v226_v36, %v224_v35  ;;  %v290_v40 = vld [vmem:[#allocation5 + $0x278] sm:$0xff]  ;;  %v223_v41 = vld [vmem:[#allocation5 + $0x60] sm:$0xff] }
  0x5f   : > { %693 = vmatpush1.bf16.msra.mxu0 %v692_v25  ;;  %631 = vmatprep.subr.bf16.mxu1 %v630_v26  ;;  %v225_v42 = vld [vmem:[#allocation5 + $0x70] sm:$0xff]  ;;  %v698_v43 = vpack.c.bf16 %v290_v40, %v288_v37  ;;  %v287_v44 = vld [vmem:[#allocation5 + $0x260] sm:$0xff]  ;;  %v228_v46 = vld [vmem:[#allocation5 + $0x88] sm:$0xff]  ;;  %p888_p7 = pnand %p887_p3, %p881_p8 }
  0x60   : > { %695 = vmatprep.subr.bf16.mxu0 %v694_v30  ;;  %v289_v45 = vld [vmem:[#allocation5 + $0x270] sm:$0xff]  ;;  %v230_v47 = vld [vmem:[#allocation5 + $0x98] sm:$0xff]  ;;  %v292_v48 = vld [vmem:[#allocation5 + $0x288] sm:$0xff]  ;;  %v636_v50 = vpack.c.bf16 %v225_v42, %v223_v41 }
  0x61   : > { %v294_v49 = vld [vmem:[#allocation5 + $0x298] sm:$0xff]  ;;  %v700_v51 = vpack.c.bf16 %v289_v45, %v287_v44  ;;  %v638_v52 = vpack.c.bf16 %v230_v47, %v228_v46  ;;  %v227_v53 = vld [vmem:[#allocation5 + $0x80] sm:$0xff]  ;;  %v229_v54 = vld [vmem:[#allocation5 + $0x90] sm:$0xff] }
  0x62   : > { %633 = vmatpush1.bf16.msra.mxu1 %v632_v34  ;;  %v291_v55 = vld [vmem:[#allocation5 + $0x280] sm:$0xff]  ;;  %v702_v56 = vpack.c.bf16 %v294_v49, %v292_v48  ;;  %v293_v57 = vld [vmem:[#allocation5 + $0x290] sm:$0xff]  ;;  %v232_v58 = vld [vmem:[#allocation5 + $0xa8] sm:$0xff]  ;;  %v640_v62 = vpack.c.bf16 %v229_v54, %v227_v53 }
  0x63   : > { %697 = vmatpush1.bf16.msra.mxu0 %v696_v38  ;;  %635 = vmatprep.subr.bf16.mxu1 %v634_v39  ;;  %v234_v59 = vld [vmem:[#allocation5 + $0xb8] sm:$0xff]  ;;  %v296_v60 = vld [vmem:[#allocation5 + $0x2a8] sm:$0xff]  ;;  %v704_v63 = vpack.c.bf16 %v293_v57, %v291_v55  ;;  %v231_v1 = vld [vmem:[#allocation5 + $0xa0] sm:$0xff] }
  0x64   : > { %699 = vmatprep.subr.bf16.mxu0 %v698_v43  ;;  %v298_v61 = vld [vmem:[#allocation5 + $0x2b8] sm:$0xff]  ;;  %v642_v0 = vpack.c.bf16 %v234_v59, %v232_v58  ;;  %v233_v2 = vld [vmem:[#allocation5 + $0xb0] sm:$0xff]  ;;  %v295_v3 = vld [vmem:[#allocation5 + $0x2a0] sm:$0xff] }
  0x65   : > { %v706_v4 = vpack.c.bf16 %v298_v61, %v296_v60  ;;  %v297_v5 = vld [vmem:[#allocation5 + $0x2b0] sm:$0xff]  ;;  %v236_v6 = vld [vmem:[#allocation5 + $0xc8] sm:$0xff]  ;;  %v238_v7 = vld [vmem:[#allocation5 + $0xd8] sm:$0xff]  ;;  %v644_v10 = vpack.c.bf16 %v233_v2, %v231_v1 }
  0x66   : > { %637 = vmatpush1.bf16.msra.mxu1 %v636_v50  ;;  %v300_v8 = vld [vmem:[#allocation5 + $0x2c8] sm:$0xff]  ;;  %v302_v9 = vld [vmem:[#allocation5 + $0x2d8] sm:$0xff]  ;;  %v708_v11 = vpack.c.bf16 %v297_v5, %v295_v3  ;;  %v646_v12 = vpack.c.bf16 %v238_v7, %v236_v6  ;;  %v235_v13 = vld [vmem:[#allocation5 + $0xc0] sm:$0xff] }
  0x67   : > { %701 = vmatpush1.bf16.msra.mxu0 %v700_v51  ;;  %639 = vmatprep.subr.bf16.mxu1 %v638_v52  ;;  %v237_v14 = vld [vmem:[#allocation5 + $0xd0] sm:$0xff]  ;;  %v299_v15 = vld [vmem:[#allocation5 + $0x2c0] sm:$0xff]  ;;  %v710_v16 = vpack.c.bf16 %v302_v9, %v300_v8  ;;  %v240_v18 = vld [vmem:[#allocation5 + $0xe8] sm:$0xff] }
  0x68   : > { %703 = vmatprep.subr.bf16.mxu0 %v702_v56  ;;  %v301_v17 = vld [vmem:[#allocation5 + $0x2d0] sm:$0xff]  ;;  %v242_v19 = vld [vmem:[#allocation5 + $0xf8] sm:$0xff]  ;;  %v304_v20 = vld [vmem:[#allocation5 + $0x2e8] sm:$0xff]  ;;  %v648_v22 = vpack.c.bf16 %v237_v14, %v235_v13 }
  0x69   : > { %v306_v21 = vld [vmem:[#allocation5 + $0x2f8] sm:$0xff]  ;;  %v712_v23 = vpack.c.bf16 %v301_v17, %v299_v15  ;;  %v650_v24 = vpack.c.bf16 %v242_v19, %v240_v18  ;;  %v239_v25 = vld [vmem:[#allocation5 + $0xe0] sm:$0xff]  ;;  %v241_v26 = vld [vmem:[#allocation5 + $0xf0] sm:$0xff] }
  0x6a   : > { %641 = vmatpush1.bf16.msra.mxu1 %v640_v62  ;;  %v303_v27 = vld [vmem:[#allocation5 + $0x2e0] sm:$0xff]  ;;  %v714_v28 = vpack.c.bf16 %v306_v21, %v304_v20  ;;  %v305_v29 = vld [vmem:[#allocation5 + $0x2f0] sm:$0xff]  ;;  %v244_v30 = vld [vmem:[#allocation5 + $0x108] sm:$0xff]  ;;  %v652_v34 = vpack.c.bf16 %v241_v26, %v239_v25 }
  0x6b   : > { %705 = vmatpush1.bf16.msra.mxu0 %v704_v63  ;;  %643 = vmatprep.subr.bf16.mxu1 %v642_v0  ;;  %v246_v31 = vld [vmem:[#allocation5 + $0x118] sm:$0xff]  ;;  %v308_v32 = vld [vmem:[#allocation5 + $0x308] sm:$0xff]  ;;  %v716_v35 = vpack.c.bf16 %v305_v29, %v303_v27  ;;  %v243_v37 = vld [vmem:[#allocation5 + $0x100] sm:$0xff] }
  0x6c   : > { %707 = vmatprep.subr.bf16.mxu0 %v706_v4  ;;  %v310_v33 = vld [vmem:[#allocation5 + $0x318] sm:$0xff]  ;;  %v654_v36 = vpack.c.bf16 %v246_v31, %v244_v30  ;;  %v245_v38 = vld [vmem:[#allocation5 + $0x110] sm:$0xff]  ;;  %v307_v39 = vld [vmem:[#allocation5 + $0x300] sm:$0xff] }
  0x6d   : > { %v718_v40 = vpack.c.bf16 %v310_v33, %v308_v32  ;;  %v309_v41 = vld [vmem:[#allocation5 + $0x310] sm:$0xff]  ;;  %v248_v42 = vld [vmem:[#allocation5 + $0x128] sm:$0xff]  ;;  %v250_v43 = vld [vmem:[#allocation5 + $0x138] sm:$0xff]  ;;  %v656_v46 = vpack.c.bf16 %v245_v38, %v243_v37 }
  0x6e   : > { %645 = vmatpush1.bf16.msra.mxu1 %v644_v10  ;;  %v312_v44 = vld [vmem:[#allocation5 + $0x328] sm:$0xff]  ;;  %v314_v45 = vld [vmem:[#allocation5 + $0x338] sm:$0xff]  ;;  %v720_v47 = vpack.c.bf16 %v309_v41, %v307_v39  ;;  %v658_v48 = vpack.c.bf16 %v250_v43, %v248_v42  ;;  %v247_v49 = vld [vmem:[#allocation5 + $0x120] sm:$0xff] }
  0x6f   : > { %709 = vmatpush1.bf16.msra.mxu0 %v708_v11  ;;  %647 = vmatprep.subr.bf16.mxu1 %v646_v12  ;;  %v249_v50 = vld [vmem:[#allocation5 + $0x130] sm:$0xff]  ;;  %v311_v51 = vld [vmem:[#allocation5 + $0x320] sm:$0xff]  ;;  %v722_v52 = vpack.c.bf16 %v314_v45, %v312_v44  ;;  %v252_v54 = vld [vmem:[#allocation5 + $0x148] sm:$0xff] }
  0x70   : > { %711 = vmatprep.subr.bf16.mxu0 %v710_v16  ;;  %v313_v53 = vld [vmem:[#allocation5 + $0x330] sm:$0xff]  ;;  %v254_v55 = vld [vmem:[#allocation5 + $0x158] sm:$0xff]  ;;  %v316_v56 = vld [vmem:[#allocation5 + $0x348] sm:$0xff]  ;;  %v660_v58 = vpack.c.bf16 %v249_v50, %v247_v49 }
  0x71   : > { %v318_v57 = vld [vmem:[#allocation5 + $0x358] sm:$0xff]  ;;  %v724_v59 = vpack.c.bf16 %v313_v53, %v311_v51  ;;  %v662_v60 = vpack.c.bf16 %v254_v55, %v252_v54  ;;  %v251_v61 = vld [vmem:[#allocation5 + $0x140] sm:$0xff]  ;;  %v253_v62 = vld [vmem:[#allocation5 + $0x150] sm:$0xff] }
  0x72   : > { %649 = vmatpush1.bf16.msra.mxu1 %v648_v22  ;;  %v315_v63 = vld [vmem:[#allocation5 + $0x340] sm:$0xff]  ;;  %v726_v0 = vpack.c.bf16 %v318_v57, %v316_v56  ;;  %v317_v1 = vld [vmem:[#allocation5 + $0x350] sm:$0xff]  ;;  %v256_v2 = vld [vmem:[#allocation5 + $0x168] sm:$0xff]  ;;  %v664_v6 = vpack.c.bf16 %v253_v62, %v251_v61 }
  0x73   : > { %713 = vmatpush1.bf16.msra.mxu0 %v712_v23  ;;  %651 = vmatprep.subr.bf16.mxu1 %v650_v24  ;;  %v258_v3 = vld [vmem:[#allocation5 + $0x178] sm:$0xff]  ;;  %v320_v4 = vld [vmem:[#allocation5 + $0x368] sm:$0xff]  ;;  %v255_v7 = vld [vmem:[#allocation5 + $0x160] sm:$0xff]  ;;  %v728_v8 = vpack.c.bf16 %v317_v1, %v315_v63 }
  0x74   : > { %715 = vmatprep.subr.bf16.mxu0 %v714_v28  ;;  %v322_v5 = vld [vmem:[#allocation5 + $0x378] sm:$0xff]  ;;  %v666_v9 = vpack.c.bf16 %v258_v3, %v256_v2  ;;  %v257_v10 = vld [vmem:[#allocation5 + $0x170] sm:$0xff]  ;;  %v319_v11 = vld [vmem:[#allocation5 + $0x360] sm:$0xff] }
  0x75   : > { %v321_v12 = vld [vmem:[#allocation5 + $0x370] sm:$0xff]  ;;  %v730_v13 = vpack.c.bf16 %v322_v5, %v320_v4  ;;  %v260_v14 = vld [vmem:[#allocation5 + $0x188] sm:$0xff]  ;;  %v262_v15 = vld [vmem:[#allocation5 + $0x198] sm:$0xff]  ;;  %v668_v22 = vpack.c.bf16 %v257_v10, %v255_v7 }
  0x76   : > { %653 = vmatpush1.bf16.msra.mxu1 %v652_v34  ;;  %v1123_v16 = vld [vmem:[%s1112_s29] sm:$0xff]  ;;  %v324_v17 = vld [vmem:[#allocation5 + $0x388] sm:$0xff]  ;;  %v259_v23 = vld [vmem:[#allocation5 + $0x180] sm:$0xff]  ;;  %v732_v27 = vpack.c.bf16 %v321_v12, %v319_v11  ;;  %v670_v28 = vpack.c.bf16 %v262_v15, %v260_v14 }
  0x77   : > { %717 = vmatpush1.bf16.msra.mxu0 %v716_v35  ;;  %655 = vmatprep.subr.bf16.mxu1 %v654_v36  ;;  %v326_v18 = vld [vmem:[#allocation5 + $0x398] sm:$0xff]  ;;  %v177_v19 = vcombine.high %v1123_v16, %v1123_v16  ;;  %v180_v20 = vsel %vm179_vm0, %v1123_v16, 0.0  ;;  %v197_v21 = vsel %vm179_vm0, %v1123_v16, -inf  ;;  %v261_v24 = vld [vmem:[#allocation5 + $0x190] sm:$0xff]  ;;  %v323_v29 = vld [vmem:[#allocation5 + $0x380] sm:$0xff] }
  0x78   : > { %719 = vmatprep.subr.bf16.mxu0 %v718_v40  ;;  %v181_v25 = vrot.slane %v180_v20, 4  ;;  %v198_v26 = vrot.slane %v197_v21, 4  ;;  %v734_v32 = vpack.c.bf16 %v326_v18, %v324_v17  ;;  %v325_v33 = vld [vmem:[#allocation5 + $0x390] sm:$0xff]  ;;  %v264_v34 = vld [vmem:[#allocation5 + $0x1a8] sm:$0xff]  ;;  %v266_v35 = vld [vmem:[#allocation5 + $0x1b8] sm:$0xff]  ;;  %v672_v39 = vpack.c.bf16 %v261_v24, %v259_v23 }
  0x79   : > { %v187_v30 = vsel %vm179_vm0, %v177_v19, 0.0  ;;  %v204_v31 = vsel %vm179_vm0, %v177_v19, -inf  ;;  %v328_v40 = vld [vmem:[#allocation5 + $0x3a8] sm:$0xff]  ;;  %v330_v41 = vld [vmem:[#allocation5 + $0x3b8] sm:$0xff]  ;;  %v265_v49 = vld [vmem:[#allocation5 + $0x1b0] sm:$0xff] }
  0x7a   : > { %657 = vmatpush1.bf16.msra.mxu1 %v656_v46  ;;  %v188_v36 = vrot.slane %v187_v30, 4  ;;  %v205_v37 = vrot.slane %v204_v31, 4  ;;  %v182_v38 = vadd.f32 %v181_v25, %v180_v20  ;;  %v199_v45 = vmax.f32 %v197_v21, %v198_v26  ;;  %v327_v50 = vld [vmem:[#allocation5 + $0x3a0] sm:$0xff]  ;;  %v268_v53 = vld [vmem:[#allocation5 + $0x1c8] sm:$0xff]  ;;  %v270_v54 = vld [vmem:[#allocation5 + $0x1d8] sm:$0xff] }
  0x7b   : > { %721 = vmatpush1.bf16.msra.mxu0 %v720_v47  ;;  %659 = vmatprep.subr.bf16.mxu1 %v658_v48  ;;  %v736_v46 = vpack.c.bf16 %v325_v33, %v323_v29  ;;  %v674_v47 = vpack.c.bf16 %v266_v35, %v264_v34  ;;  %v263_v48 = vld [vmem:[#allocation5 + $0x1a0] sm:$0xff]  ;;  %v738_v51 = vpack.c.bf16 %v330_v41, %v328_v40  ;;  %v332_v57 = vld [vmem:[#allocation5 + $0x3c8] sm:$0xff]  ;;  %v269_v3 = vld [vmem:[#allocation5 + $0x1d0] sm:$0xff] }
  0x7c   : > { %723 = vmatprep.subr.bf16.mxu0 %v722_v52  ;;  %v189_v42 = vadd.f32 %v188_v36, %v187_v30  ;;  %v206_v43 = vmax.f32 %v204_v31, %v205_v37  ;;  %v183_v44 = vrot.slane %v182_v38, 2  ;;  %v329_v52 = vld [vmem:[#allocation5 + $0x3b0] sm:$0xff]  ;;  %v200_v63 = vrot.slane %v199_v45, 2  ;;  %v267_v2 = vld [vmem:[#allocation5 + $0x1c0] sm:$0xff]  ;;  %v272_v7 = vld [vmem:[#allocation5 + $0x1e8] sm:$0xff] }
  0x7d   : > { %v678_v1 = vpack.c.bf16 %v270_v54, %v268_v53  ;;  %v331_v4 = vld [vmem:[#allocation5 + $0x3c0] sm:$0xff]  ;;  %v336_v11 = vld [vmem:[#allocation5 + $0x3e8] sm:$0xff]  ;;  %v338_v12 = vld [vmem:[#allocation5 + $0x3f8] sm:$0xff]  ;;  %v680_v14 = vpack.c.bf16 %v269_v3, %v267_v2 }
  0x7e   : > { %661 = vmatpush1.bf16.msra.mxu1 %v660_v58  ;;  %v190_v55 = vrot.slane %v189_v42, 2  ;;  %v207_v56 = vrot.slane %v206_v43, 2  ;;  %v334_v58 = vld [vmem:[#allocation5 + $0x3d8] sm:$0xff]  ;;  %v201_v18 = vmax.f32 %v199_v45, %v200_v63  ;;  %v271_v21 = vld [vmem:[#allocation5 + $0x1e0] sm:$0xff]  ;;  %v746_v23 = vpack.c.bf16 %v338_v12, %v336_v11  ;;  %v337_v25 = vld [vmem:[#allocation5 + $0x3f0] sm:$0xff] }
  0x7f   : > { %725 = vmatpush1.bf16.msra.mxu0 %v724_v59  ;;  %663 = vmatprep.subr.bf16.mxu1 %v662_v60  ;;  %v184_v59 = vadd.f32 %v183_v44, %v182_v38  ;;  %v676_v60 = vpack.c.bf16 %v265_v49, %v263_v48  ;;  %v742_v5 = vpack.c.bf16 %v334_v58, %v332_v57  ;;  %v335_v24 = vld [vmem:[#allocation5 + $0x3e0] sm:$0xff]  ;;  %v493_v45 = vlaneseq }
  0x80   : > { %727 = vmatprep.subr.bf16.mxu0 %v726_v0  ;;  %v191_v61 = vadd.f32 %v190_v55, %v189_v42  ;;  %v208_v62 = vmax.f32 %v206_v43, %v207_v56  ;;  %v740_v0 = vpack.c.bf16 %v329_v52, %v327_v50  ;;  %v202_v29 = vrot.slane %v201_v18, 1 }
  0x81   : > { %v748_v30 = vpack.c.bf16 %v337_v25, %v335_v24 }
  0x82   : > { %665 = vmatpush1.bf16.msra.mxu1 %v664_v6  ;;  %v333_v6 = vld [vmem:[#allocation5 + $0x3d0] sm:$0xff]  ;;  %v209_v10 = vrot.slane %v208_v62, 1 }
  0x83   : > { %729 = vmatpush1.bf16.msra.mxu0 %v728_v8  ;;  %667 = vmatprep.subr.bf16.mxu1 %v666_v9  ;;  %v274_v8 = vld [vmem:[#allocation5 + $0x1f8] sm:$0xff]  ;;  %v192_v9 = vrot.slane %v191_v61, 1  ;;  %v744_v19 = vpack.c.bf16 %v333_v6, %v331_v4 }
  0x84   : > { %731 = vmatprep.subr.bf16.mxu0 %v730_v13  ;;  %v185_v13 = vrot.slane %v184_v59, 1  ;;  %v210_v17 = vmax.f32 %v208_v62, %v209_v10  ;;  %v682_v20 = vpack.c.bf16 %v274_v8, %v272_v7 }
  0x85   : > { %v193_v15 = vadd.f32 %v192_v9, %v191_v61 }
  0x86   : > { %669 = vmatpush1.bf16.msra.mxu1 %v668_v22  ;;  %v273_v22 = vld [vmem:[#allocation5 + $0x1f0] sm:$0xff]  ;;  %474 = vmatprep.mubr.f32.mxu0 %v210_v17 }
  0x87   : > { %733 = vmatpush1.bf16.msra.mxu0 %v732_v27  ;;  %671 = vmatprep.subr.bf16.mxu1 %v670_v28  ;;  %v196_v26 = vmul.f32 0.25, %v193_v15  ;;  %v186_v27 = vadd.f32 %v185_v13, %v184_v59  ;;  %v684_v28 = vpack.c.bf16 %v273_v22, %v271_v21 }
  0x88   : > { %735 = vmatprep.subr.bf16.mxu0 %v734_v32  ;;  %v203_v32 = vmax.f32 %v201_v18, %v202_v29 }
  0x89   : > { %403 = vmatprep.mubr.f32.mxu1 %v196_v26  ;;  %v195_v31 = vmul.f32 0.25, %v186_v27 }
  0x8a   : > { %673 = vmatpush1.bf16.msra.mxu1 %v672_v39 }
  0x8b   : > { %737 = vmatpush1.bf16.msra.mxu0 %v736_v46  ;;  %675 = vmatprep.subr.bf16.mxu1 %v674_v47  ;;  %v494_v46 = vshrl.u32 %v493_v45, 7 }
  0x8c   : > { %739 = vmatprep.subr.bf16.mxu0 %v738_v51 }
  0x8d   : > { %v495_v47 = vsub.s32 0, %v494_v46 }
  0x8e   : > { %677 = vmatpush1.bf16.msra.mxu1 %v676_v60 }
  0x8f   : > { %741 = vmatpush1.bf16.msra.mxu0 %v740_v0  ;;  %679 = vmatprep.subr.bf16.mxu1 %v678_v1 }
  0x90   : > { %743 = vmatprep.subr.bf16.mxu0 %v742_v5 }
  0x92   : > { %681 = vmatpush1.bf16.msra.mxu1 %v680_v14 }
  0x93   : > { %745 = vmatpush1.bf16.msra.mxu0 %v744_v19  ;;  %683 = vmatprep.subr.bf16.mxu1 %v682_v20 }
  0x94   : > { %747 = vmatprep.subr.bf16.mxu0 %v746_v23 }
  0x96   : > { %685 = vmatpush1.bf16.msra.mxu1 %v684_v28 }
  0x97   : > { %749 = vmatpush1.bf16.msra.mxu0 %v748_v30 }
  0x99   : > { %404 = vmatmul.mubr.f32.vlgmr.msra.gmra.mrb[0].mxu1 %v195_v31 }
  0x9a   : > { %475 = vmatmul.mubr.f32.vlgmr.msra.gmra.mrb[0].mxu0 %v203_v32 }
 0x16c   : > { %v405_v33 = vpop.f32.mrb[0].mxu1 }
 0x16d   : > { %v476_v34 = vpop.f32.mrb[0].mxu0  ;;  %v407_v35 = vpop.f32.mrb[1].mxu1 }
 0x16e   : > { %v477_v36 = vadd.f32 %v476_v34, %v405_v33  ;;  %v478_v37 = vpop.f32.mrb[1].mxu0 }
 0x16f   : > { %v479_v38 = vadd.f32 %v478_v37, %v407_v35 }
 0x170   : > { %v613_v39 = vmul.f32 -1.442695, %v477_v36 }
 0x171   : > { %v614_v40 = vmul.f32 -1.442695, %v479_v38 }
 0x172   : > { %812 = vpow2.f32 %v613_v39 }
 0x173   : > { %814 = vpow2.f32 %v614_v40 }
 0x17c   : > { %v813_v41 = vpop.eup %812 }
 0x17d   : > { %v815_v42 = vpop.eup %814  ;;  %v487_v43 = vadd.f32 1.0, %v813_v41 }
 0x17e   : > { %v488_v44 = vadd.f32 1.0, %v815_v42 }
 0x17f   : > { %816 = vrcp.f32 %v487_v43 }
 0x180   : > { %818 = vrcp.f32 %v488_v44 }
 0x189   : > { %v817_v48 = vpop.eup %816 }
 0x18a   : > { %v819_v49 = vpop.eup %818  ;;  %v496_v50 = vrot.slane %v817_v48, %v495_v47 }
 0x18b   : > { %v500_v51 = vrot.slane %v819_v49, %v495_v47 }
 0x18d   : > { %v503_v52 = vcombine.low %v496_v50, %v500_v51 }
 0x18f   : > { %v505_v53 = vmul.f32 %v503_v52, %v1123_v16 }
 0x191   : > { %506 = vst [vmem:[%s174_s17] sm:$0xff] %v505_v53 }
 0x192   : > { %891 = shalt.err (!%p888_p7)
}
 0x193   : > { %s892_s6 = scalar_lea.hbm %s1140_s28, 128  ;;  %s896_s24 = scalar_lea.hbm %s1186_s2, 256 }
 0x194   : > { %p893_p9 = scmp.ne.s32.totalorder %s1140_s28, %s892_s6  ;;  %p897_p0 = scmp.lt.u32.totalorder %s1140_s28, %s1186_s2 }
 0x195   : > { %p898_p11 = scmp.lt.u32.totalorder %s896_s24, %s892_s6  ;;  %p900_p4 = scmp.lt.u32.totalorder %s892_s6, %s1140_s28 }
 0x196   : > { %p894_p2 = pnand %p893_p9, %p1061_p12 }
 0x197   : > { %p899_p1 = por %p898_p11, %p897_p0 }
 0x198   : > { %p895_p5 = pneg %p894_p2 }
 0x199   : > { %p901_p6 = por %p900_p4, %p899_p1 }
 0x19b   : > { %p902_p8 = pnand %p901_p6, %p895_p5 }
 0x19d   : > { %905 = shalt.err (!%p902_p8)
}
 0x19e   : > { %758 = dma.vmem_to_hbm [thread:$0]  (%p1061_p12), %s1142_s27, 128, %s1140_s28, %s508_s30  }
 0x19f PF: > { %s534_s26 = sand.u32 1, %s936_s9   ;;  %p1201_p10 = scmp.ne.s32.totalorder %s1191_s16, 0 }
 0x1a0   : > { %p1202_p13 = scmp.ge.s32.totalorder %s948_s12, 2  ;;  %s535_s19 = scalar_lea.sflag [#allocation4], %s534_s26 }
 0x1a2   : > { %p769_p3 = pnand %p1202_p13, %p1201_p10 }
 0x1a4   : > { %931 = dma.done.wait (!%p769_p3), %s535_s19, 128  }
 0x1a5   : > { %933 = vsyncadd (!%p769_p3), %s535_s19, 4294967168  ;;  %p16_p7 = scmp.ge.s32.totalorder %s1026_s21, 4   ;;  %s1203_s9 = smov %s940_s10 }
 0x1a6   : > { %s1204_s10 = smov %s944_s11  ;;  %s1205_s11 = smov %s1057_s8 }
 0x1a7   : > { %s1206_s12 = smov %s1026_s21  ;;  %18 = sbr.rel (!%p16_p7) target bundleno = 6 (0x6), region = 77 }
 0x1ae   :  { %540 = vsyncpa [#allocation3], 1 }
 0x1af   :  { %542 = vsyncpa [#allocation3 + $0x1], 1 }
 0x1b0   :  { %543 = vsyncpa [#allocation6], 1 }
 0x1b1   :  { %544 = vsyncpa [#allocation4], 1 }
 0x1b2   :  { %546 = vsyncpa [#allocation4 + $0x1], 1 }

</bundles_post_ra>
